<compile_context>
chip_gen: v6e
topology: v6e:2x2x1
jax: 0.10.0
libtpu: 0.0.40
codegen_flags: <defaults>
</compile_context>

<pallas_src>
import functools

import jax
import jax.numpy as jnp
from jax.experimental import pallas as pl
from jax.experimental.pallas import tpu as pltpu


# ------------------------------------------------------------------ LSTM cell
def _lstm_cell(gates, c_prev, H):
    # PyTorch gate order: i, f, g, o
    i_g = jax.nn.sigmoid(gates[:, 0 * H:1 * H])
    f_g = jax.nn.sigmoid(gates[:, 1 * H:2 * H])
    g_g = jnp.tanh(gates[:, 2 * H:3 * H])
    o_g = jax.nn.sigmoid(gates[:, 3 * H:4 * H])
    c_new = f_g * c_prev + i_g * g_g
    h_new = o_g * jnp.tanh(c_new)
    return h_new, c_new


# --------------------------------------------------------------- fused kernel
def clstm_fused_kernel(*refs, n_layers, T, N, H):
    # refs = (cols, wconv_blockdiag, bconv,
    #         [wih_f, whh_f, b_f, wih_r, whh_r, b_r] * n_layers,
    #         out, gxf_sc, gxr_sc, hf_sc, hr_sc)
    cols_ref, wconv_ref, bconv_ref = refs[:3]
    lstm_refs = refs[3:3 + 6 * n_layers]
    out_ref = refs[3 + 6 * n_layers]
    gxf_sc, gxr_sc, hf_sc, hr_sc = refs[3 + 6 * n_layers + 1:]

    # ---- all conv kernel-size branches as ONE block-diagonal matmul + ReLU --
    cnn = jnp.dot(cols_ref[...], wconv_ref[...],
                  preferred_element_type=jnp.float32)          # (T*N, F*nk) f32
    x = jnp.maximum(cnn + bconv_ref[...], 0.0)                 # stays on-chip

    # ---- bidirectional multi-layer LSTM (time == B, batch == L) -------------
    for layer in range(n_layers):                              # static unroll
        wih_f, whh_f, b_f, wih_r, whh_r, b_r = \
            lstm_refs[6 * layer:6 * layer + 6]

        x_flat = x.reshape(T * N, -1).astype(jnp.bfloat16)

        # Input projection hoisted out of the recurrence: one big MXU matmul
        # per direction (bias folded in here, outside the loop).
        gxf_sc[...] = (jnp.dot(x_flat, wih_f[...],
                               preferred_element_type=jnp.float32)
                       + b_f[...]).reshape(T, N, 4 * H)
        gxr_sc[...] = (jnp.dot(x_flat, wih_r[...],
                               preferred_element_type=jnp.float32)
                       + b_r[...]).reshape(T, N, 4 * H)

        def step(t, carry, whh_f=whh_f, whh_r=whh_r):
            h_f, c_f, h_r, c_r = carry
            tr = T - 1 - t
            # forward direction
            gf = gxf_sc[t] + jnp.dot(h_f.astype(jnp.bfloat16), whh_f[...],
                                     preferred_element_type=jnp.float32)
            h_f, c_f = _lstm_cell(gf, c_f, H)
            hf_sc[t] = h_f
            # reverse direction (in-kernel time reversal, no jnp.flip)
            gr = gxr_sc[tr] + jnp.dot(h_r.astype(jnp.bfloat16), whh_r[...],
                                      preferred_element_type=jnp.float32)
            h_r, c_r = _lstm_cell(gr, c_r, H)
            hr_sc[tr] = h_r
            return (h_f, c_f, h_r, c_r)

        z = jnp.zeros((N, H), jnp.float32)
        jax.lax.fori_loop(0, T, step, (z, z, z, z), unroll=True)

        x = jnp.concatenate([hf_sc[...], hr_sc[...]], axis=-1)  # (T, N, 2H)

    # transpose + tanh + full-width max_pool1d  ==  tanh(max over N) (monotone)
    out_ref[...] = jnp.tanh(jnp.max(x, axis=1))                 # (T, 2H)


# ------------------------------------------------------------------- wrapper
def _im2col(emb, kernel_sizes):
    # emb: (B, L, E) -> (B*L, sum_k k*E); column block layout (dk, e) = dk*E+e
    B, L, _ = emb.shape
    blocks = []
    for k in kernel_sizes:
        pad = k // 2                                  # k is odd -> 'same' length
        xpad = jnp.pad(emb, ((0, 0), (pad, pad), (0, 0)))
        windows = [xpad[:, dk:dk + L, :] for dk in range(k)]
        blocks.append(jnp.concatenate(windows, axis=-1))        # (B, L, k*E)
    return jnp.concatenate(blocks, axis=-1).reshape(B * L, -1)


def word_clstm_forward(tokens, params):
    # TODO(synk): embedding gather + eval-time Dropout (identity) stay in XLA
    # glue; hidden2label is defined but never used in the reference forward().
    emb = jnp.take(params['embed'], tokens, axis=0)             # (B, L, E) f32
    B, L, _ = emb.shape
    H = params['H']
    n_layers = len(params['lstm'])

    cols = _im2col(emb, params['kernel_sizes']).astype(jnp.bfloat16)

    lstm_flat = []
    for layer in params['lstm']:
        lstm_flat += [layer['wih_f'], layer['whh_f'], layer['b_f'],
                      layer['wih_r'], layer['whh_r'], layer['b_r']]

    T, N = B, L          # non-batch_first nn.LSTM quirk: time == B, batch == L
    n_in = 3 + len(lstm_flat)
    kernel = functools.partial(clstm_fused_kernel,
                               n_layers=n_layers, T=T, N=N, H=H)

    pooled = pl.pallas_call(
        kernel,
        out_shape=jax.ShapeDtypeStruct((T, 2 * H), jnp.float32),
        in_specs=[pl.BlockSpec(memory_space=pltpu.MemorySpace.VMEM)] * n_in,
        out_specs=pl.BlockSpec(memory_space=pltpu.MemorySpace.VMEM),
        scratch_shapes=[pltpu.VMEM((T, N, 4 * H), jnp.float32),   # gates_x fwd
                        pltpu.VMEM((T, N, 4 * H), jnp.float32),   # gates_x rev
                        pltpu.VMEM((T, N, H), jnp.float32),       # h-seq fwd
                        pltpu.VMEM((T, N, H), jnp.float32)],      # h-seq rev
        compiler_params=pltpu.CompilerParams(
            vmem_limit_bytes=32 * 1024 * 1024),
    )(cols, params['conv_wbd'], params['conv_bias'], *lstm_flat)

    return pooled[None]                                           # (1, B, 2H)


# --------------------------------------------------------------- param init
def init_params(key, args):
    E = args['wordCLSTM_embed']
    F = args['wordCLSTM_filter']
    # same even->odd kernel-size bump the reference module performs
    KK = [k + 1 if k % 2 == 0 else k for k in args['wordCLSTM_kernel']]
    H = F
    nk = len(KK)
    n_layers = args['wordCLSTM_lstm_layer']
    keys = iter(jax.random.split(key, 1 + 2 * nk + 8 * n_layers))

    params = {'H': H, 'kernel_sizes': KK}
    params['embed'] = jax.random.normal(next(keys), (args['vocab'], E),
                                        jnp.float32)

    # per-branch Conv2d weights -> single block-diagonal matmul weight
    KE = sum(k * E for k in KK)
    Ftot = F * nk
    wbd = jnp.zeros((KE, Ftot), jnp.float32)
    biases = []
    row = 0
    for bi, k in enumerate(KK):
        bound = 1.0 / (k * E) ** 0.5
        w = jax.random.uniform(next(keys), (F, 1, k, E), jnp.float32,
                               -bound, bound)
        b = jax.random.uniform(next(keys), (F,), jnp.float32, -bound, bound)
        wr = jnp.transpose(w[:, 0, :, :], (1, 2, 0)).reshape(k * E, F)
        wbd = wbd.at[row:row + k * E, bi * F:(bi + 1) * F].set(wr)
        biases.append(b)
        row += k * E
    params['conv_wbd'] = wbd.astype(jnp.bfloat16)                 # MXU operand
    params['conv_bias'] = jnp.concatenate(biases).reshape(1, Ftot)

    lstm_layers = []
    for layer_idx in range(n_layers):
        I = Ftot if layer_idx == 0 else 2 * H
        bound = 1.0 / H ** 0.5
        layer = {}
        for tag in ('f', 'r'):
            wih = jax.random.uniform(next(keys), (4 * H, I), jnp.float32,
                                     -bound, bound)
            whh = jax.random.uniform(next(keys), (4 * H, H), jnp.float32,
                                     -bound, bound)
            bih = jax.random.uniform(next(keys), (4 * H,), jnp.float32,
                                     -bound, bound)
            bhh = jax.random.uniform(next(keys), (4 * H,), jnp.float32,
                                     -bound, bound)
            layer[f'wih_{tag}'] = wih.T.astype(jnp.bfloat16)      # (I, 4H)
            layer[f'whh_{tag}'] = whh.T.astype(jnp.bfloat16)      # (H, 4H)
            layer[f'b_{tag}'] = (bih + bhh).reshape(1, 4 * H)     # f32
        lstm_layers.append(layer)
    params['lstm'] = lstm_layers
    return params


if __name__ == "__main__":
    args = dict(vocab=50, wordCLSTM_embed=16, wordCLSTM_filter=8,
                wordCLSTM_kernel=[3, 4], wordCLSTM_lstm_layer=1,
                dropout=0.0, num_class=5)
    key = jax.random.PRNGKey(0)
    pkey, tkey = jax.random.split(key)
    params = init_params(pkey, args)

    B, L = 2, 8
    tokens = jax.random.randint(tkey, (B, L), 0, args['vocab'],
                                dtype=jnp.int32)

    out = word_clstm_forward(tokens, params)
    out = jax.block_until_ready(out)
    assert out.shape == (1, B, 2 * args['wordCLSTM_filter']), out.shape
    assert out.dtype == jnp.float32
    print("KERNEL_OK")
</pallas_src>

<mosaic_0001>
module attributes {stable_mosaic.version = 11 : i64} {
  func.func @clstm_fused_kernel(%arg0: memref<16x128xbf16, #tpu.memory_space<vmem>>, %arg1: memref<128x16xbf16, #tpu.memory_space<vmem>>, %arg2: memref<1x16xf32, #tpu.memory_space<vmem>>, %arg3: memref<16x32xbf16, #tpu.memory_space<vmem>>, %arg4: memref<8x32xbf16, #tpu.memory_space<vmem>>, %arg5: memref<1x32xf32, #tpu.memory_space<vmem>>, %arg6: memref<16x32xbf16, #tpu.memory_space<vmem>>, %arg7: memref<8x32xbf16, #tpu.memory_space<vmem>>, %arg8: memref<1x32xf32, #tpu.memory_space<vmem>>, %arg9: memref<2x16xf32, #tpu.memory_space<vmem>>, %arg10: memref<2x8x32xf32, #tpu.memory_space<vmem>>, %arg11: memref<2x8x32xf32, #tpu.memory_space<vmem>>, %arg12: memref<2x8x8xf32, #tpu.memory_space<vmem>>, %arg13: memref<2x8x8xf32, #tpu.memory_space<vmem>>) attributes {dimension_semantics = [], scalar_prefetch = 0 : i64, scratch_operands = 4 : i64, tpu.core_type = #tpu.core_type<tc>} {
    %c0 = arith.constant 0 : index
    %c0_0 = arith.constant 0 : index
    %0 = vector.load %arg0[%c0, %c0_0] : memref<16x128xbf16, #tpu.memory_space<vmem>>, vector<16x128xbf16>
    %c0_1 = arith.constant 0 : index
    %c0_2 = arith.constant 0 : index
    %1 = vector.load %arg1[%c0_1, %c0_2] : memref<128x16xbf16, #tpu.memory_space<vmem>>, vector<128x16xbf16>
    %cst = arith.constant dense<0.000000e+00> : vector<16x16xf32>
    %2 = tpu.matmul %0, %1, %cst {dimension_numbers = #tpu.dot_dimension_numbers<[1], [0], [0], [1], [0, 0, 1, 1], [], []>} : vector<16x128xbf16>, vector<128x16xbf16>, vector<16x16xf32> -> vector<16x16xf32>
    %c0_3 = arith.constant 0 : index
    %c0_4 = arith.constant 0 : index
    %3 = vector.load %arg2[%c0_3, %c0_4] : memref<1x16xf32, #tpu.memory_space<vmem>>, vector<1x16xf32>
    %4 = vector.broadcast %3 : vector<1x16xf32> to vector<16x16xf32>
    %5 = arith.addf %2, %4 : vector<16x16xf32>
    %cst_5 = arith.constant 0.000000e+00 : f32
    %6 = vector.broadcast %cst_5 : f32 to vector<16x16xf32>
    %7 = arith.maximumf %5, %6 : vector<16x16xf32>
    %8 = arith.truncf %7 : vector<16x16xf32> to vector<16x16xbf16>
    %c0_6 = arith.constant 0 : index
    %c0_7 = arith.constant 0 : index
    %9 = vector.load %arg3[%c0_6, %c0_7] : memref<16x32xbf16, #tpu.memory_space<vmem>>, vector<16x32xbf16>
    %cst_8 = arith.constant dense<0.000000e+00> : vector<16x32xf32>
    %10 = tpu.matmul %8, %9, %cst_8 {dimension_numbers = #tpu.dot_dimension_numbers<[1], [0], [0], [1], [0, 0, 1, 1], [], []>} : vector<16x16xbf16>, vector<16x32xbf16>, vector<16x32xf32> -> vector<16x32xf32>
    %c0_9 = arith.constant 0 : index
    %c0_10 = arith.constant 0 : index
    %11 = vector.load %arg5[%c0_9, %c0_10] : memref<1x32xf32, #tpu.memory_space<vmem>>, vector<1x32xf32>
    %12 = vector.broadcast %11 : vector<1x32xf32> to vector<16x32xf32>
    %13 = arith.addf %10, %12 : vector<16x32xf32>
    %14 = vector.shape_cast %13 : vector<16x32xf32> to vector<2x8x32xf32>
    %c0_11 = arith.constant 0 : index
    %c0_12 = arith.constant 0 : index
    %c0_13 = arith.constant 0 : index
    %15 = vector.load %arg10[%c0_11, %c0_12, %c0_13] : memref<2x8x32xf32, #tpu.memory_space<vmem>>, vector<2x8x32xf32>
    tpu.vector_store %arg10[%c0_11, %c0_12, %c0_13], %14 {strides = array<i32>} : memref<2x8x32xf32, #tpu.memory_space<vmem>>, vector<2x8x32xf32>,
    %c0_14 = arith.constant 0 : index
    %c0_15 = arith.constant 0 : index
    %16 = vector.load %arg6[%c0_14, %c0_15] : memref<16x32xbf16, #tpu.memory_space<vmem>>, vector<16x32xbf16>
    %cst_16 = arith.constant dense<0.000000e+00> : vector<16x32xf32>
    %17 = tpu.matmul %8, %16, %cst_16 {dimension_numbers = #tpu.dot_dimension_numbers<[1], [0], [0], [1], [0, 0, 1, 1], [], []>} : vector<16x16xbf16>, vector<16x32xbf16>, vector<16x32xf32> -> vector<16x32xf32>
    %c0_17 = arith.constant 0 : index
    %c0_18 = arith.constant 0 : index
    %18 = vector.load %arg8[%c0_17, %c0_18] : memref<1x32xf32, #tpu.memory_space<vmem>>, vector<1x32xf32>
    %19 = vector.broadcast %18 : vector<1x32xf32> to vector<16x32xf32>
    %20 = arith.addf %17, %19 : vector<16x32xf32>
    %21 = vector.shape_cast %20 : vector<16x32xf32> to vector<2x8x32xf32>
    %c0_19 = arith.constant 0 : index
    %c0_20 = arith.constant 0 : index
    %c0_21 = arith.constant 0 : index
    %22 = vector.load %arg11[%c0_19, %c0_20, %c0_21] : memref<2x8x32xf32, #tpu.memory_space<vmem>>, vector<2x8x32xf32>
    tpu.vector_store %arg11[%c0_19, %c0_20, %c0_21], %21 {strides = array<i32>} : memref<2x8x32xf32, #tpu.memory_space<vmem>>, vector<2x8x32xf32>,
    %cst_22 = arith.constant 0.000000e+00 : f32
    %23 = vector.broadcast %cst_22 : f32 to vector<8x8xf32>
    %c0_i32 = arith.constant 0 : i32
    %c1_i32 = arith.constant 1 : i32
    %24 = arith.subi %c1_i32, %c0_i32 : i32
    %25 = arith.index_cast %c0_i32 : i32 to index
    %c0_23 = arith.constant 0 : index
    %c0_24 = arith.constant 0 : index
    %26 = vector.load %arg10[%25, %c0_23, %c0_24] : memref<2x8x32xf32, #tpu.memory_space<vmem>>, vector<1x8x32xf32>
    %27 = vector.shape_cast %26 : vector<1x8x32xf32> to vector<8x32xf32>
    %28 = arith.truncf %23 : vector<8x8xf32> to vector<8x8xbf16>
    %c0_25 = arith.constant 0 : index
    %c0_26 = arith.constant 0 : index
    %29 = vector.load %arg4[%c0_25, %c0_26] : memref<8x32xbf16, #tpu.memory_space<vmem>>, vector<8x32xbf16>
    %cst_27 = arith.constant dense<0.000000e+00> : vector<8x32xf32>
    %30 = tpu.matmul %28, %29, %cst_27 {dimension_numbers = #tpu.dot_dimension_numbers<[1], [0], [0], [1], [0, 0, 1, 1], [], []>} : vector<8x8xbf16>, vector<8x32xbf16>, vector<8x32xf32> -> vector<8x32xf32>
    %31 = arith.addf %27, %30 : vector<8x32xf32>
    %32 = vector.extract_strided_slice %31 {offsets = [0, 0], sizes = [8, 8], strides = [1, 1]} : vector<8x32xf32> to vector<8x8xf32>
    %33 = arith.negf %32 : vector<8x8xf32>
    %34 = math.exp %33 : vector<8x8xf32>
    %cst_28 = arith.constant 1.000000e+00 : f32
    %35 = vector.broadcast %cst_28 : f32 to vector<8x8xf32>
    %36 = arith.addf %35, %34 : vector<8x8xf32>
    %37 = arith.divf %35, %36 : vector<8x8xf32>
    %38 = vector.extract_strided_slice %31 {offsets = [0, 8], sizes = [8, 8], strides = [1, 1]} : vector<8x32xf32> to vector<8x8xf32>
    %39 = arith.negf %38 : vector<8x8xf32>
    %40 = math.exp %39 : vector<8x8xf32>
    %cst_29 = arith.constant 1.000000e+00 : f32
    %41 = vector.broadcast %cst_29 : f32 to vector<8x8xf32>
    %42 = arith.addf %41, %40 : vector<8x8xf32>
    %43 = arith.divf %41, %42 : vector<8x8xf32>
    %44 = vector.extract_strided_slice %31 {offsets = [0, 16], sizes = [8, 8], strides = [1, 1]} : vector<8x32xf32> to vector<8x8xf32>
    %45 = math.tanh %44 : vector<8x8xf32>
    %46 = vector.extract_strided_slice %31 {offsets = [0, 24], sizes = [8, 8], strides = [1, 1]} : vector<8x32xf32> to vector<8x8xf32>
    %47 = arith.negf %46 : vector<8x8xf32>
    %48 = math.exp %47 : vector<8x8xf32>
    %cst_30 = arith.constant 1.000000e+00 : f32
    %49 = vector.broadcast %cst_30 : f32 to vector<8x8xf32>
    %50 = arith.addf %49, %48 : vector<8x8xf32>
    %51 = arith.divf %49, %50 : vector<8x8xf32>
    %52 = arith.mulf %43, %23 : vector<8x8xf32>
    %53 = arith.mulf %37, %45 : vector<8x8xf32>
    %54 = arith.addf %52, %53 : vector<8x8xf32>
    %55 = math.tanh %54 : vector<8x8xf32>
    %56 = arith.mulf %51, %55 : vector<8x8xf32>
    %57 = arith.index_cast %c0_i32 : i32 to index
    %c0_31 = arith.constant 0 : index
    %c0_32 = arith.constant 0 : index
    %58 = vector.load %arg12[%57, %c0_31, %c0_32] : memref<2x8x8xf32, #tpu.memory_space<vmem>>, vector<1x8x8xf32>
    %59 = vector.shape_cast %58 : vector<1x8x8xf32> to vector<8x8xf32>
    %60 = vector.shape_cast %56 : vector<8x8xf32> to vector<1x8x8xf32>
    tpu.vector_store %arg12[%57, %c0_31, %c0_32], %60 {strides = array<i32>} : memref<2x8x8xf32, #tpu.memory_space<vmem>>, vector<1x8x8xf32>,
    %61 = arith.index_cast %24 : i32 to index
    %c0_33 = arith.constant 0 : index
    %c0_34 = arith.constant 0 : index
    %62 = vector.load %arg11[%61, %c0_33, %c0_34] : memref<2x8x32xf32, #tpu.memory_space<vmem>>, vector<1x8x32xf32>
    %63 = vector.shape_cast %62 : vector<1x8x32xf32> to vector<8x32xf32>
    %64 = arith.truncf %23 : vector<8x8xf32> to vector<8x8xbf16>
    %c0_35 = arith.constant 0 : index
    %c0_36 = arith.constant 0 : index
    %65 = vector.load %arg7[%c0_35, %c0_36] : memref<8x32xbf16, #tpu.memory_space<vmem>>, vector<8x32xbf16>
    %cst_37 = arith.constant dense<0.000000e+00> : vector<8x32xf32>
    %66 = tpu.matmul %64, %65, %cst_37 {dimension_numbers = #tpu.dot_dimension_numbers<[1], [0], [0], [1], [0, 0, 1, 1], [], []>} : vector<8x8xbf16>, vector<8x32xbf16>, vector<8x32xf32> -> vector<8x32xf32>
    %67 = arith.addf %63, %66 : vector<8x32xf32>
    %68 = vector.extract_strided_slice %67 {offsets = [0, 0], sizes = [8, 8], strides = [1, 1]} : vector<8x32xf32> to vector<8x8xf32>
    %69 = arith.negf %68 : vector<8x8xf32>
    %70 = math.exp %69 : vector<8x8xf32>
    %cst_38 = arith.constant 1.000000e+00 : f32
    %71 = vector.broadcast %cst_38 : f32 to vector<8x8xf32>
    %72 = arith.addf %71, %70 : vector<8x8xf32>
    %73 = arith.divf %71, %72 : vector<8x8xf32>
    %74 = vector.extract_strided_slice %67 {offsets = [0, 8], sizes = [8, 8], strides = [1, 1]} : vector<8x32xf32> to vector<8x8xf32>
    %75 = arith.negf %74 : vector<8x8xf32>
    %76 = math.exp %75 : vector<8x8xf32>
    %cst_39 = arith.constant 1.000000e+00 : f32
    %77 = vector.broadcast %cst_39 : f32 to vector<8x8xf32>
    %78 = arith.addf %77, %76 : vector<8x8xf32>
    %79 = arith.divf %77, %78 : vector<8x8xf32>
    %80 = vector.extract_strided_slice %67 {offsets = [0, 16], sizes = [8, 8], strides = [1, 1]} : vector<8x32xf32> to vector<8x8xf32>
    %81 = math.tanh %80 : vector<8x8xf32>
    %82 = vector.extract_strided_slice %67 {offsets = [0, 24], sizes = [8, 8], strides = [1, 1]} : vector<8x32xf32> to vector<8x8xf32>
    %83 = arith.negf %82 : vector<8x8xf32>
    %84 = math.exp %83 : vector<8x8xf32>
    %cst_40 = arith.constant 1.000000e+00 : f32
    %85 = vector.broadcast %cst_40 : f32 to vector<8x8xf32>
    %86 = arith.addf %85, %84 : vector<8x8xf32>
    %87 = arith.divf %85, %86 : vector<8x8xf32>
    %88 = arith.mulf %79, %23 : vector<8x8xf32>
    %89 = arith.mulf %73, %81 : vector<8x8xf32>
    %90 = arith.addf %88, %89 : vector<8x8xf32>
    %91 = math.tanh %90 : vector<8x8xf32>
    %92 = arith.mulf %87, %91 : vector<8x8xf32>
    %93 = arith.index_cast %24 : i32 to index
    %c0_41 = arith.constant 0 : index
    %c0_42 = arith.constant 0 : index
    %94 = vector.load %arg13[%93, %c0_41, %c0_42] : memref<2x8x8xf32, #tpu.memory_space<vmem>>, vector<1x8x8xf32>
    %95 = vector.shape_cast %94 : vector<1x8x8xf32> to vector<8x8xf32>
    %96 = vector.shape_cast %92 : vector<8x8xf32> to vector<1x8x8xf32>
    tpu.vector_store %arg13[%93, %c0_41, %c0_42], %96 {strides = array<i32>} : memref<2x8x8xf32, #tpu.memory_space<vmem>>, vector<1x8x8xf32>,
    %c1_i32_43 = arith.constant 1 : i32
    %c1_i32_44 = arith.constant 1 : i32
    %97 = arith.subi %c1_i32_44, %c1_i32_43 : i32
    %98 = arith.index_cast %c1_i32_43 : i32 to index
    %c0_45 = arith.constant 0 : index
    %c0_46 = arith.constant 0 : index
    %99 = vector.load %arg10[%98, %c0_45, %c0_46] : memref<2x8x32xf32, #tpu.memory_space<vmem>>, vector<1x8x32xf32>
    %100 = vector.shape_cast %99 : vector<1x8x32xf32> to vector<8x32xf32>
    %101 = arith.truncf %56 : vector<8x8xf32> to vector<8x8xbf16>
    %c0_47 = arith.constant 0 : index
    %c0_48 = arith.constant 0 : index
    %102 = vector.load %arg4[%c0_47, %c0_48] : memref<8x32xbf16, #tpu.memory_space<vmem>>, vector<8x32xbf16>
    %cst_49 = arith.constant dense<0.000000e+00> : vector<8x32xf32>
    %103 = tpu.matmul %101, %102, %cst_49 {dimension_numbers = #tpu.dot_dimension_numbers<[1], [0], [0], [1], [0, 0, 1, 1], [], []>} : vector<8x8xbf16>, vector<8x32xbf16>, vector<8x32xf32> -> vector<8x32xf32>
    %104 = arith.addf %100, %103 : vector<8x32xf32>
    %105 = vector.extract_strided_slice %104 {offsets = [0, 0], sizes = [8, 8], strides = [1, 1]} : vector<8x32xf32> to vector<8x8xf32>
    %106 = arith.negf %105 : vector<8x8xf32>
    %107 = math.exp %106 : vector<8x8xf32>
    %cst_50 = arith.constant 1.000000e+00 : f32
    %108 = vector.broadcast %cst_50 : f32 to vector<8x8xf32>
    %109 = arith.addf %108, %107 : vector<8x8xf32>
    %110 = arith.divf %108, %109 : vector<8x8xf32>
    %111 = vector.extract_strided_slice %104 {offsets = [0, 8], sizes = [8, 8], strides = [1, 1]} : vector<8x32xf32> to vector<8x8xf32>
    %112 = arith.negf %111 : vector<8x8xf32>
    %113 = math.exp %112 : vector<8x8xf32>
    %cst_51 = arith.constant 1.000000e+00 : f32
    %114 = vector.broadcast %cst_51 : f32 to vector<8x8xf32>
    %115 = arith.addf %114, %113 : vector<8x8xf32>
    %116 = arith.divf %114, %115 : vector<8x8xf32>
    %117 = vector.extract_strided_slice %104 {offsets = [0, 16], sizes = [8, 8], strides = [1, 1]} : vector<8x32xf32> to vector<8x8xf32>
    %118 = math.tanh %117 : vector<8x8xf32>
    %119 = vector.extract_strided_slice %104 {offsets = [0, 24], sizes = [8, 8], strides = [1, 1]} : vector<8x32xf32> to vector<8x8xf32>
    %120 = arith.negf %119 : vector<8x8xf32>
    %121 = math.exp %120 : vector<8x8xf32>
    %cst_52 = arith.constant 1.000000e+00 : f32
    %122 = vector.broadcast %cst_52 : f32 to vector<8x8xf32>
    %123 = arith.addf %122, %121 : vector<8x8xf32>
    %124 = arith.divf %122, %123 : vector<8x8xf32>
    %125 = arith.mulf %116, %54 : vector<8x8xf32>
    %126 = arith.mulf %110, %118 : vector<8x8xf32>
    %127 = arith.addf %125, %126 : vector<8x8xf32>
    %128 = math.tanh %127 : vector<8x8xf32>
    %129 = arith.mulf %124, %128 : vector<8x8xf32>
    %130 = arith.index_cast %c1_i32_43 : i32 to index
    %c0_53 = arith.constant 0 : index
    %c0_54 = arith.constant 0 : index
    %131 = vector.load %arg12[%130, %c0_53, %c0_54] : memref<2x8x8xf32, #tpu.memory_space<vmem>>, vector<1x8x8xf32>
    %132 = vector.shape_cast %131 : vector<1x8x8xf32> to vector<8x8xf32>
    %133 = vector.shape_cast %129 : vector<8x8xf32> to vector<1x8x8xf32>
    tpu.vector_store %arg12[%130, %c0_53, %c0_54], %133 {strides = array<i32>} : memref<2x8x8xf32, #tpu.memory_space<vmem>>, vector<1x8x8xf32>,
    %134 = arith.index_cast %97 : i32 to index
    %c0_55 = arith.constant 0 : index
    %c0_56 = arith.constant 0 : index
    %135 = vector.load %arg11[%134, %c0_55, %c0_56] : memref<2x8x32xf32, #tpu.memory_space<vmem>>, vector<1x8x32xf32>
    %136 = vector.shape_cast %135 : vector<1x8x32xf32> to vector<8x32xf32>
    %137 = arith.truncf %92 : vector<8x8xf32> to vector<8x8xbf16>
    %c0_57 = arith.constant 0 : index
    %c0_58 = arith.constant 0 : index
    %138 = vector.load %arg7[%c0_57, %c0_58] : memref<8x32xbf16, #tpu.memory_space<vmem>>, vector<8x32xbf16>
    %cst_59 = arith.constant dense<0.000000e+00> : vector<8x32xf32>
    %139 = tpu.matmul %137, %138, %cst_59 {dimension_numbers = #tpu.dot_dimension_numbers<[1], [0], [0], [1], [0, 0, 1, 1], [], []>} : vector<8x8xbf16>, vector<8x32xbf16>, vector<8x32xf32> -> vector<8x32xf32>
    %140 = arith.addf %136, %139 : vector<8x32xf32>
    %141 = vector.extract_strided_slice %140 {offsets = [0, 0], sizes = [8, 8], strides = [1, 1]} : vector<8x32xf32> to vector<8x8xf32>
    %142 = arith.negf %141 : vector<8x8xf32>
    %143 = math.exp %142 : vector<8x8xf32>
    %cst_60 = arith.constant 1.000000e+00 : f32
    %144 = vector.broadcast %cst_60 : f32 to vector<8x8xf32>
    %145 = arith.addf %144, %143 : vector<8x8xf32>
    %146 = arith.divf %144, %145 : vector<8x8xf32>
    %147 = vector.extract_strided_slice %140 {offsets = [0, 8], sizes = [8, 8], strides = [1, 1]} : vector<8x32xf32> to vector<8x8xf32>
    %148 = arith.negf %147 : vector<8x8xf32>
    %149 = math.exp %148 : vector<8x8xf32>
    %cst_61 = arith.constant 1.000000e+00 : f32
    %150 = vector.broadcast %cst_61 : f32 to vector<8x8xf32>
    %151 = arith.addf %150, %149 : vector<8x8xf32>
    %152 = arith.divf %150, %151 : vector<8x8xf32>
    %153 = vector.extract_strided_slice %140 {offsets = [0, 16], sizes = [8, 8], strides = [1, 1]} : vector<8x32xf32> to vector<8x8xf32>
    %154 = math.tanh %153 : vector<8x8xf32>
    %155 = vector.extract_strided_slice %140 {offsets = [0, 24], sizes = [8, 8], strides = [1, 1]} : vector<8x32xf32> to vector<8x8xf32>
    %156 = arith.negf %155 : vector<8x8xf32>
    %157 = math.exp %156 : vector<8x8xf32>
    %cst_62 = arith.constant 1.000000e+00 : f32
    %158 = vector.broadcast %cst_62 : f32 to vector<8x8xf32>
    %159 = arith.addf %158, %157 : vector<8x8xf32>
    %160 = arith.divf %158, %159 : vector<8x8xf32>
    %161 = arith.mulf %152, %90 : vector<8x8xf32>
    %162 = arith.mulf %146, %154 : vector<8x8xf32>
    %163 = arith.addf %161, %162 : vector<8x8xf32>
    %164 = math.tanh %163 : vector<8x8xf32>
    %165 = arith.mulf %160, %164 : vector<8x8xf32>
    %166 = arith.index_cast %97 : i32 to index
    %c0_63 = arith.constant 0 : index
    %c0_64 = arith.constant 0 : index
    %167 = vector.load %arg13[%166, %c0_63, %c0_64] : memref<2x8x8xf32, #tpu.memory_space<vmem>>, vector<1x8x8xf32>
    %168 = vector.shape_cast %167 : vector<1x8x8xf32> to vector<8x8xf32>
    %169 = vector.shape_cast %165 : vector<8x8xf32> to vector<1x8x8xf32>
    tpu.vector_store %arg13[%166, %c0_63, %c0_64], %169 {strides = array<i32>} : memref<2x8x8xf32, #tpu.memory_space<vmem>>, vector<1x8x8xf32>,
    %c2_i32 = arith.constant 2 : i32
    %c0_65 = arith.constant 0 : index
    %c0_66 = arith.constant 0 : index
    %c0_67 = arith.constant 0 : index
    %170 = vector.load %arg12[%c0_65, %c0_66, %c0_67] : memref<2x8x8xf32, #tpu.memory_space<vmem>>, vector<2x8x8xf32>
    %c0_68 = arith.constant 0 : index
    %c0_69 = arith.constant 0 : index
    %c0_70 = arith.constant 0 : index
    %171 = vector.load %arg13[%c0_68, %c0_69, %c0_70] : memref<2x8x8xf32, #tpu.memory_space<vmem>>, vector<2x8x8xf32>
    %172 = tpu.concatenate %170, %171 in 2 : vector<2x8x8xf32>, vector<2x8x8xf32> -> vector<2x8x16xf32>
    %cst_71 = arith.constant dense<0xFF800000> : vector<2x16xf32>
    %173 = vector.multi_reduction <maximumf>, %172, %cst_71 [1] : vector<2x8x16xf32> to vector<2x16xf32>
    %174 = math.tanh %173 : vector<2x16xf32>
    %c0_72 = arith.constant 0 : index
    %c0_73 = arith.constant 0 : index
    %175 = vector.load %arg9[%c0_72, %c0_73] : memref<2x16xf32, #tpu.memory_space<vmem>>, vector<2x16xf32>
    tpu.vector_store %arg9[%c0_72, %c0_73], %174 {strides = array<i32>} : memref<2x16xf32, #tpu.memory_space<vmem>>, vector<2x16xf32>,
    return
  }
}

</mosaic_0001>

<bundles_post_ra>
// kernel: tpu_custom_call.1
= control target key start
LH: loop header
LB: loop body
LE: loop exit
PB: predicated region body
PF: predicated region fallthrough
CT: control target
= control target key end

     0   :  { %v828_v1 = vmov 0.0   ;;  %vm829_vm0 = vmmov 0   ;;  %s1019_s0 = inlined_call_operand.vmem [shape: bf16[16,128], index: 0, kind: input, shape index: {}]   ;;  %s1020_s1 = inlined_call_operand.vmem [shape: bf16[128,16], index: 1, kind: input, shape index: {}]   ;;  %s1021_s2 = inlined_call_operand.vmem [shape: f32[1,16], index: 2, kind: input, shape index: {}]   ;;  %s1022_s3 = inlined_call_operand.vmem [shape: bf16[16,32], index: 3, kind: input, shape index: {}]   ;;  %s1023_s4 = inlined_call_operand.vmem [shape: bf16[8,32], index: 4, kind: input, shape index: {}]   ;;  %s1024_s5 = inlined_call_operand.vmem [shape: f32[1,32], index: 5, kind: input, shape index: {}]   ;;  %s1025_s6 = inlined_call_operand.vmem [shape: bf16[16,32], index: 6, kind: input, shape index: {}]   ;;  %s1026_s7 = inlined_call_operand.vmem [shape: bf16[8,32], index: 7, kind: input, shape index: {}]   ;;  %s1027_s8 = inlined_call_operand.vmem [shape: f32[1,32], index: 8, kind: input, shape index: {}]   ;;  %s1028_s9 = inlined_call_operand.hbm [shape: f32[2,16], index: 9, kind: output, shape index: {}]  }
   0x1   :  { %v759_v0 = vld [vmem:[%s1020_s1 + $0x38] sm:$0xff]   ;;  %695 = vmatprep.subr.bf16.mxu0 %v828_v1  ;;  %715 = vmatprep.subr.bf16.mxu1 %v828_v1  ;;  %v760_v2 = vld [vmem:[%s1020_s1 + $0x30] sm:$0xff]   ;;  %v761_v3 = vld [vmem:[%s1020_s1 + $0x28] sm:$0xff]  }
   0x2   :  { %696 = vmatpush3.bf16.msra.mxu0 %v759_v0  ;;  %711 = vmatprep.mubr.msk.bf16.mxu0 %vm829_vm0, %v828_v1  ;;  %v762_v4 = vld [vmem:[%s1020_s1 + $0x20] sm:$0xff]  }
   0x3   :  { %697 = vmatprep.subr.bf16.mxu0 %v828_v1  ;;  %717 = vmatprep.mubr.msk.bf16.mxu1 %vm829_vm0, %v828_v1 }
   0x6   :  { %698 = vmatpush3.bf16.msra.mxu0 %v760_v2 }
   0x7   :  { %699 = vmatprep.subr.bf16.mxu0 %v828_v1 }
   0xa   :  { %700 = vmatpush3.bf16.msra.mxu0 %v761_v3 }
   0xb   :  { %14 = vsyncpa [#allocation7], 0  ;;  %701 = vmatprep.subr.bf16.mxu0 %v828_v1  ;;  %v763_v5 = vld [vmem:[%s1020_s1 + $0x18] sm:$0xff]   ;;  %v764_v6 = vld [vmem:[%s1020_s1 + $0x10] sm:$0xff]   ;;  %vm172_vm1 = vcmask 130048   ;;  %vm284_vm2 = vcmask 1043456  }
   0xc   :  { %v765_v7 = vld [vmem:[%s1020_s1 + $0x8] sm:$0xff]   ;;  %v766_v8 = vld [vmem:[%s1020_s1] sm:$0xff]   ;;  %v830_v26 = vmov 0   ;;  %vm217_vm3 = vcmask 261120   ;;  %s833_s17 = smov 16   ;;  %vm280_vm4 = vcmask 64512  }
   0xd   :  { %v767_v9 = vld [vmem:[%s1019_s0] sm:$0xff]   ;;  %vm633_vm5 = vcmask 1041409   ;;  %vm636_vm6 = vcmask 123904  }
   0xe   :  { %702 = vmatpush3.bf16.msra.mxu0 %v762_v4  ;;  %v768_v10 = vld [vmem:[%s1022_s3] sm:$0xff]  }
   0xf   :  { %703 = vmatprep.subr.bf16.mxu0 %v828_v1  ;;  %716 = vmatpush3.bf16.msra.mxu1 %v768_v10  ;;  %v652_v11 = vld [vmem:[%s1021_s2] ss:$0 sm:$0xff] }
  0x10   :  { %721 = vmatprep.subr.bf16.mxu1 %v828_v1  ;;  %v769_v20 = vld [vmem:[%s1025_s6] sm:$0xff]  }
  0x11   :  { %v279_v22 = vld [vmem:[%s1023_s4] sm:$0xf] }
  0x12   :  { %704 = vmatpush3.bf16.msra.mxu0 %v763_v5  ;;  %v286_v23 = vsel %vm284_vm2, %v279_v22, 0  ;;  %v360_v24 = vld [vmem:[%s1026_s7] sm:$0xf] }
  0x13   :  { %705 = vmatprep.subr.bf16.mxu0 %v828_v1  ;;  %v362_v25 = vsel %vm284_vm2, %v360_v24, 0  ;;  %v662_v27 = vld [vmem:[%s1024_s5] ss:$0 sm:$0xff]  ;;  %s831_s5 = smov 112  }
  0x14   :  { %v665_v34 = vld [vmem:[%s1027_s8] ss:$0 sm:$0xff]  ;;  %s832_s8 = smov 8  }
  0x16   :  { %706 = vmatpush3.bf16.msra.mxu0 %v764_v6 }
  0x17   :  { %707 = vmatprep.subr.bf16.mxu0 %v828_v1 }
  0x1a   :  { %708 = vmatpush3.bf16.msra.mxu0 %v765_v7 }
  0x1b   :  { %709 = vmatprep.subr.bf16.mxu0 %v828_v1 }
  0x1e   :  { %710 = vmatpush3.bf16.msra.mxu0 %v766_v8 }
  0x1f   :  { %745 = vmatprep.subr.bf16.mxu0 %v828_v1 }
  0x21   :  { %712 = vmatmul.mubr.bf16.vlgmr.msra.gmra.mxu0 %v767_v9  ;;  %v521_v9 = vld [vmem:[%s1026_s7] sm:$0xf]  ;;  %s834_s7 = smov 104  }
  0x22   :  { %747 = vmatprep.mubr.msk.bf16.mxu0 %vm829_vm0, %v828_v1  ;;  %v529_v10 = vsel %vm284_vm2, %v521_v9, 0 }
  0x23   :  { %746 = vmatpush3.bf16.msra.mxu0 %v529_v10 }
  0xe1   :  { %v147_v12 = vpop.f32.mrf.mxu0 }
  0xe2   :  { %v148_v14 = vadd.f32 %v652_v11, %v147_v12 }
  0xe3   :  { %v713_v13 = vpop.f32.mrf.mxu0 }
  0xe4   :  { %v154_v18 = vmax.f32 %v148_v14, 0.0  ;;  %v438_v13 = vld [vmem:[%s1023_s4] sm:$0xf]  ;;  %s835_s4 = smov [#allocation6]  }
  0xe5   :  { %v150_v15 = vpop.f32.mrf.mxu0  ;;  %v446_v14 = vsel %vm284_vm2, %v438_v13, 0  ;;  %s644_s20 = sshll.u32 %s835_s4, 4  ;;  %s645_s20 = int_to_ptr.vmem [resolvable:$true] %s644_s20 }
  0xe6   :  { %v151_v16 = vadd.f32 %v652_v11, %v150_v15  ;;  %s806_s21 = scalar_lea.vmem %s645_s20, 32  ;;  %p811_p1 = scmp.lt.s32.totalorder %s645_s20, %s645_s20 }
  0xe7   :  { %v714_v17 = vpop.f32.mrf.mxu0  ;;  %p807_p0 = scmp.ne.s32.totalorder %s645_s20, %s806_s21  ;;  %p812_p2 = scmp.lt.s32.totalorder %s806_s21, %s806_s21 }
  0xe8   :  { %v155_v19 = vmax.f32 %v151_v16, 0.0 }
  0xe9   :  { %p813_p3 = por %p812_p2, %p811_p1 }
  0xea   :  { %v156_v21 = vpack.c.bf16 %v155_v19, %v154_v18 }
  0xeb   :  { %p814_p4 = pnand %p813_p3, %p807_p0 }
  0xec   :  { %718 = vmatmul.mubr.msk.bf16.vlgmr.msra.gmra.mxu1 %vm172_vm1, %v156_v21 }
  0xed   :  { %722 = vmatpush3.bf16.msra.mxu1 %v769_v20  ;;  %723 = vmatprep.mubr.msk.bf16.mxu1 %vm829_vm0, %v828_v1 }
  0xee   :  { %727 = vmatprep.subr.bf16.mxu1 %v828_v1 }
  0xf4   :  { %724 = vmatmul.mubr.msk.bf16.vlgmr.msra.gmra.mxu1 %vm172_vm1, %v156_v21 }
  0xf5   :  { %728 = vmatpush3.bf16.msra.mxu1 %v286_v23  ;;  %729 = vmatprep.mubr.msk.bf16.mxu1 %vm829_vm0, %v828_v1 }
  0xf6   :  { %733 = vmatprep.subr.bf16.mxu1 %v828_v1 }
  0xfc   :  { %730 = vmatmul.mubr.bf16.vlgmr.msra.gmra.mxu1 %v830_v26 }
  0xfd   :  { %734 = vmatpush3.bf16.msra.mxu1 %v362_v25  ;;  %735 = vmatprep.mubr.msk.bf16.mxu1 %vm829_vm0, %v828_v1 }
  0xfe   :  { %739 = vmatprep.subr.bf16.mxu1 %v828_v1 }
 0x104   :  { %736 = vmatmul.mubr.bf16.vlgmr.msra.gmra.mxu1 %v830_v26 }
 0x105   :  { %741 = vmatprep.mubr.msk.bf16.mxu1 %vm829_vm0, %v828_v1  ;;  %740 = vmatpush3.bf16.msra.mxu1 %v446_v14 }
 0x1ac   :  { %v210_v28 = vpop.f32.mrf.mxu1 }
 0x1ad   :  { %v211_v29 = vadd.f32 %v662_v27, %v210_v28 }
 0x1ae   :  { %v719_v30 = vpop.f32.mrf.mxu1 }
 0x1af   :  { %218 = vst.msk [vmem:[#allocation2] sm:$0xff] %vm217_vm3, %v211_v29 }
 0x1b0   :  { %v213_v31 = vpop.f32.mrf.mxu1 }
 0x1b1   :  { %v214_v32 = vadd.f32 %v662_v27, %v213_v31 }
 0x1b2   :  { %v720_v33 = vpop.f32.mrf.mxu1 }
 0x1b3   :  { %219 = vst.msk [vmem:[#allocation2 + $0x8] sm:$0xff] %vm217_vm3, %v214_v32 }
 0x1b4   :  { %v269_v35 = vpop.f32.mrf.mxu1 }
 0x1b5   :  { %v270_v36 = vadd.f32 %v665_v34, %v269_v35 }
 0x1b6   :  { %v725_v37 = vpop.f32.mrf.mxu1  ;;  %v278_v48 = vld [vmem:[#allocation2] sm:$0xff] }
 0x1b7   :  { %276 = vst.msk [vmem:[#allocation3] sm:$0xff] %vm217_vm3, %v270_v36 }
 0x1b8   :  { %v272_v38 = vpop.f32.mrf.mxu1 }
 0x1b9   :  { %v273_v39 = vadd.f32 %v665_v34, %v272_v38 }
 0x1ba   :  { %v726_v40 = vpop.f32.mrf.mxu1  ;;  %v436_v27 = vld [vmem:[#allocation2 + $0x8] sm:$0xff] }
 0x1bb   :  { %277 = vst.msk [vmem:[#allocation3 + $0x8] sm:$0xff] %vm217_vm3, %v273_v39 }
 0x1bc   :  { %v322_v41 = vpop.f32.mrf.mxu1 }
 0x1bd   :  { %v328_v50 = vadd.f32 %v322_v41, %v278_v48 }
 0x1be   :  { %v731_v42 = vpop.f32.mrf.mxu1  ;;  %v519_v23 = vld [vmem:[#allocation3] sm:$0xff] }
 0x1bf   :  { %v668_v56 = vmul.f32 -1.442695, %v328_v50 }
 0x1c0   :  { %v325_v43 = vpop.f32.mrf.mxu1 }
 0x1c2   :  { %v732_v44 = vpop.f32.mrf.mxu1  ;;  %v359_v45 = vld [vmem:[#allocation3 + $0x8] sm:$0xff] }
 0x1c4   :  { %v398_v46 = vpop.f32.mrf.mxu1 }
 0x1c5   :  { %v404_v47 = vadd.f32 %v398_v46, %v359_v45 }
 0x1c6   :  { %v737_v49 = vpop.f32.mrf.mxu1 }
 0x1c7   :  { %770 = vtanh.f32 %v404_v47  ;;  %v669_v55 = vmul.f32 -1.442695, %v404_v47 }
 0x1c8   :  { %v401_v51 = vpop.f32.mrf.mxu1  ;;  %772 = vtanh.f32 %v328_v50 }
 0x1c9   :  { %774 = vpow2.f32 %v669_v55 }
 0x1ca   :  { %v738_v52 = vpop.f32.mrf.mxu1  ;;  %776 = vpow2.f32 %v668_v56 }
 0x1d4   :  { %v771_v53 = vpop.eup %770 }
 0x1d5   :  { %414 = vrot.lane.b32.xlu0 %v771_v53, %s831_s5  ;;  %v773_v54 = vpop.eup %772 }
 0x1d6   :  { %v775_v57 = vpop.eup %774 }
 0x1d7   :  { %v408_v58 = vadd.f32 1.0, %v775_v57  ;;  %v777_v59 = vpop.eup %776 }
 0x1d8   :  { %v332_v60 = vadd.f32 1.0, %v777_v59 }
 0x1d9   :  { %338 = vrot.lane.b32.xlu0 %v773_v54, %s831_s5  ;;  %778 = vrcp.f32 %v408_v58 }
 0x1da   :  { %780 = vrcp.f32 %v332_v60 }
 0x1e6   :  { %v779_v61 = vpop.eup %778 }
 0x1e7   :  { %v781_v0 = vpop.eup %780  ;;  %v412_v3 = vmul.f32 0.0, %v779_v61 }
 0x1e8   :  { %v336_v6 = vmul.f32 0.0, %v781_v0 }
 0x247   :  { %v415_v62 = vpop.permute.xlu0 %414 }
 0x248   :  { %v417_v63 = vmul.f32 %v779_v61, %v415_v62 }
 0x24a   :  { %419 = vrot.lane.b32.xlu1 %v417_v63, %s832_s8 }
 0x24b   :  { %v339_v1 = vpop.permute.xlu0 %338 }
 0x24c   :  { %v341_v2 = vmul.f32 %v781_v0, %v339_v1 }
 0x24e   :  { %343 = vrot.lane.b32.xlu1 %v341_v2, %s832_s8 }
 0x2bc   :  { %v420_v4 = vpop.permute.xlu1 %419 }
 0x2bd   :  { %v974_v5 = vadd.f32 %v420_v4, %v412_v3 }
 0x2bf   :  { %782 = vtanh.f32 %v974_v5 }
 0x2c0   :  { %v344_v7 = vpop.permute.xlu1 %343 }
 0x2c1   :  { %v977_v8 = vadd.f32 %v344_v7, %v336_v6 }
 0x2c3   :  { %784 = vtanh.f32 %v977_v8 }
 0x2cc   :  { %v783_v11 = vpop.eup %782 }
 0x2cd   :  { %425 = vrot.lane.b32.xlu0 %v783_v11, %s833_s17 }
 0x2d0   :  { %v785_v12 = vpop.eup %784 }
 0x2d1   :  { %349 = vrot.lane.b32.xlu1 %v785_v12, %s833_s17 }
 0x33f   :  { %v426_v15 = vpop.permute.xlu0 %425 }
 0x340   :  { %v428_v16 = vmul.f32 %v779_v61, %v426_v15 }
 0x342   :  { %v520_v17 = vpack.c.bf16 %v428_v16, %v428_v16 }
 0x343   :  { %v350_v18 = vpop.permute.xlu1 %349 }
 0x344   :  { %v352_v19 = vmul.f32 %v781_v0, %v350_v18  ;;  %523 = vrot.lane.b32.xlu0 %v520_v17, %s834_s7 }
 0x346   :  { %v437_v20 = vpack.c.bf16 %v352_v19, %v352_v19 }
 0x348   :  { %440 = vrot.lane.b32.xlu1 %v437_v20, %s834_s7 }
 0x3b6   :  { %v524_v21 = vpop.permute.xlu0 %523 }
 0x3b7   :  { %748 = vmatmul.mubr.msk.bf16.vlgmr.msra.gmra.mxu0 %vm280_vm4, %v524_v21 }
 0x3ba   :  { %v441_v22 = vpop.permute.xlu1 %440 }
 0x3bb   :  { %742 = vmatmul.mubr.msk.bf16.vlgmr.msra.gmra.mxu1 %vm280_vm4, %v441_v22 }
 0x477   :  { %v565_v24 = vpop.f32.mrf.mxu0 }
 0x478   :  { %v571_v25 = vadd.f32 %v565_v24, %v519_v23 }
 0x479   :  { %v749_v26 = vpop.f32.mrf.mxu0 }
 0x47a   :  { %786 = vtanh.f32 %v571_v25  ;;  %v673_v37 = vmul.f32 -1.442695, %v571_v25 }
 0x47b   :  { %v482_v28 = vpop.f32.mrf.mxu1  ;;  %v568_v29 = vpop.f32.mrf.mxu0 }
 0x47c   :  { %v488_v30 = vadd.f32 %v482_v28, %v436_v27 }
 0x47d   :  { %v743_v31 = vpop.f32.mrf.mxu1  ;;  %v750_v32 = vpop.f32.mrf.mxu0 }
 0x47e   :  { %788 = vtanh.f32 %v488_v30  ;;  %v671_v38 = vmul.f32 -1.442695, %v488_v30 }
 0x47f   :  { %v485_v33 = vpop.f32.mrf.mxu1  ;;  %790 = vpow2.f32 %v673_v37 }
 0x480   :  { %792 = vpow2.f32 %v671_v38 }
 0x481   :  { %v744_v34 = vpop.f32.mrf.mxu1 }
 0x487   :  { %v787_v35 = vpop.eup %786 }
 0x488   :  { %581 = vrot.lane.b32.xlu0 %v787_v35, %s831_s5 }
 0x48b   :  { %v789_v36 = vpop.eup %788 }
 0x48c   :  { %498 = vrot.lane.b32.xlu1 %v789_v36, %s831_s5  ;;  %v791_v39 = vpop.eup %790 }
 0x48d   :  { %v575_v40 = vadd.f32 1.0, %v791_v39  ;;  %v793_v41 = vpop.eup %792 }
 0x48e   :  { %v492_v42 = vadd.f32 1.0, %v793_v41 }
 0x48f   :  { %794 = vrcp.f32 %v575_v40 }
 0x490   :  { %796 = vrcp.f32 %v492_v42 }
 0x49c   :  { %v795_v43 = vpop.eup %794 }
 0x49d   :  { %v797_v46 = vpop.eup %796  ;;  %v579_v49 = vmul.f32 %v795_v43, %v974_v5 }
 0x49e   :  { %v496_v52 = vmul.f32 %v797_v46, %v977_v8 }
 0x4fa   :  { %v582_v44 = vpop.permute.xlu0 %581 }
 0x4fb   :  { %v584_v45 = vmul.f32 %v795_v43, %v582_v44 }
 0x4fd   :  { %586 = vrot.lane.b32.xlu0 %v584_v45, %s832_s8 }
 0x4fe   :  { %v499_v47 = vpop.permute.xlu1 %498 }
 0x4ff   :  { %v501_v48 = vmul.f32 %v797_v46, %v499_v47 }
 0x501   :  { %503 = vrot.lane.b32.xlu1 %v501_v48, %s832_s8 }
 0x56f   :  { %v587_v50 = vpop.permute.xlu0 %586 }
 0x570   :  { %v589_v51 = vadd.f32 %v587_v50, %v579_v49 }
 0x572   :  { %798 = vtanh.f32 %v589_v51 }
 0x573   :  { %v504_v53 = vpop.permute.xlu1 %503 }
 0x574   :  { %v506_v54 = vadd.f32 %v504_v53, %v496_v52 }
 0x576   :  { %800 = vtanh.f32 %v506_v54 }
 0x57f   :  { %v799_v55 = vpop.eup %798 }
 0x580   :  { %592 = vrot.lane.b32.xlu0 %v799_v55, %s833_s17 }
 0x583   :  { %v801_v56 = vpop.eup %800 }
 0x584   :  { %509 = vrot.lane.b32.xlu1 %v801_v56, %s833_s17  ;;  %430 = vrot.lane.b32.xlu0 %v428_v16, %s834_s7 }
 0x588   :  { %354 = vrot.lane.b32.xlu0 %v352_v19, %s834_s7 }
 0x5f2   :  { %v593_v57 = vpop.permute.xlu0 %592 }
 0x5f3   :  { %v595_v58 = vmul.f32 %v795_v43, %v593_v57 }
 0x5f5   :  { %597 = vrot.lane.b32.xlu1 %v595_v58, %s834_s7 }
 0x5f6   :  { %v510_v59 = vpop.permute.xlu1 %509  ;;  %v431_v60 = vpop.permute.xlu0 %430 }
 0x5f7   :  { %v512_v61 = vmul.f32 %v797_v46, %v510_v59  ;;  %434 = vst.msk [vmem:[#allocation5 + $0x8] sm:$0xff] %vm280_vm4, %v431_v60 }
 0x5f9   :  { %514 = vrot.lane.b32.xlu1 %v512_v61, %s834_s7 }
 0x5fa   :  { %v355_v62 = vpop.permute.xlu0 %354 }
 0x5fb   :  { %357 = vst.msk [vmem:[#allocation4] sm:$0xff] %vm280_vm4, %v355_v62 }
 0x5fe   :  { %v604_v63 = vld [vmem:[#allocation5 + $0x8] sm:$0xff] }
 0x5ff   :  { %609 = vrot.lane.b32.xlu1 %v604_v63, %s832_s8 }
 0x602   :  { %v601_v10 = vld [vmem:[#allocation4] sm:$0xff] }
 0x667   :  { %v598_v0 = vpop.permute.xlu1 %597 }
 0x668   :  { %600 = vst.msk [vmem:[#allocation5] sm:$0xff] %vm280_vm4, %v598_v0 }
 0x66b   :  { %v515_v1 = vpop.permute.xlu1 %514 }
 0x66c   :  { %518 = vst.msk [vmem:[#allocation4 + $0x8] sm:$0xff] %vm280_vm4, %v515_v1 }
 0x66f   :  { %v603_v2 = vld [vmem:[#allocation5] sm:$0xff] }
 0x670   :  { %607 = vrot.lane.b32.xlu0 %v603_v2, %s832_s8 }
 0x671   :  { %v610_v4 = vpop.permute.xlu1 %609 }
 0x673   :  { %v602_v3 = vld [vmem:[#allocation4 + $0x8] sm:$0xff] }
 0x674   :  { %v614_v5 = vsel %vm280_vm4, %v602_v3, %v610_v4 }
 0x675   :  { %v622_v6 = vsel %vm172_vm1, %v614_v5, -inf }
 0x676   :  { %v623_v7 = vrot.slane %v622_v6, 4 }
 0x678   :  { %v624_v8 = vmax.f32 %v622_v6, %v623_v7 }
 0x67a   :  { %v625_v9 = vrot.slane %v624_v8, 2 }
 0x67c   :  { %v626_v13 = vmax.f32 %v624_v8, %v625_v9 }
 0x67e   :  { %v627_v17 = vrot.slane %v626_v13, 1 }
 0x680   :  { %v628_v20 = vmax.f32 %v626_v13, %v627_v17 }
 0x682   :  { %802 = vtanh.f32 %v628_v20 }
 0x68f   :  { %v803_v23 = vpop.eup %802 }
 0x6e2   :  { %v608_v11 = vpop.permute.xlu0 %607 }
 0x6e3   :  { %v613_v12 = vsel %vm280_vm4, %v601_v10, %v608_v11 }
 0x6e4   :  { %v615_v14 = vsel %vm172_vm1, %v613_v12, -inf }
 0x6e5   :  { %v616_v15 = vrot.slane %v615_v14, 4 }
 0x6e7   :  { %v617_v16 = vmax.f32 %v615_v14, %v616_v15 }
 0x6e9   :  { %v618_v18 = vrot.slane %v617_v16, 2 }
 0x6eb   :  { %v619_v19 = vmax.f32 %v617_v16, %v618_v18 }
 0x6ed   :  { %v620_v21 = vrot.slane %v619_v19, 1 }
 0x6ef   :  { %v621_v22 = vmax.f32 %v619_v19, %v620_v21 }
 0x6f1   :  { %804 = vtanh.f32 %v621_v22 }
 0x6fe   :  { %v805_v24 = vpop.eup %804 }
 0x6ff   :  { %v634_v25 = vsel %vm633_vm5, %v803_v23, %v805_v24 }
 0x700   :  { %637 = vst.msk [vmem:[#allocation6] sm:$0x3] %vm636_vm6, %v634_v25 }
 0x701   :  { %817 = shalt.err (!%p814_p4)
}
 0x702   :  { %647 = dma.vmem_to_hbm [thread:$0]  %s645_s20, 32, %s1028_s9, [#allocation7]  }
 0x703   :  { %826 = dma.done.wait [#allocation7], 32  }
 0x704   :  { %827 = vsyncadd [#allocation7], 4294967264 }
 0x705   :  { %651 = vsyncpa [#allocation7], 1 }

</bundles_post_ra>
